<compile_context>
chip_gen: v5e
topology: v5e:2x2
jax: 0.10.0
libtpu: 0.0.40
codegen_flags: <defaults>
</compile_context>

<pallas_src>
import math

import jax
import jax.numpy as jnp
from jax.experimental import pallas as pl
from jax.experimental.pallas import tpu as pltpu


# ---------------------------------------------------------------------------
# helpers
# ---------------------------------------------------------------------------

def _largest_aligned_divisor(dim, align, cap):
    """Largest divisor of `dim` that is a multiple of `align` and <= cap, else None."""
    cap = min(dim, cap)
    cap -= cap % align
    for cand in range(cap, 0, -align):
        if dim % cand == 0:
            return cand
    return None


def _slab_shape(b, f, itemsize):
    """Lane-dense 2D slab (R, L) holding the B*F flattened elements.

    L is a multiple of 128 (unmasked lane-dense stores) and, when possible,
    R is a multiple of the dtype-aware sublane alignment (full-vreg blocks).
    Falls back to (B, F) when B*F has no multiple-of-128 divisor; full-dim
    blocks keep that case legal.
    """
    n = b * f
    sub_align = max(8, 32 // itemsize)        # f32: 8, bf16: 16, int8/fp8: 32
    lane_cap = max(128, 8192 // itemsize)     # keep per-row bytes dtype-independent
    for require_aligned_rows in (True, False):
        lane = lane_cap - lane_cap % 128
        while lane > 0:
            if n % lane == 0:
                rows = n // lane
                if not require_aligned_rows or rows % sub_align == 0:
                    return rows, lane
            lane -= 128
    return b, f


# ---------------------------------------------------------------------------
# mode="tiled": BlockSpec-pipelined VMEM identity copy
# ---------------------------------------------------------------------------

def _tiled_copy_kernel(x_ref, o_ref):
    o_ref[...] = x_ref[...]


def _tiled_copy(x_slab, *, alias_input=False):
    rows, cols = x_slab.shape
    itemsize = jnp.dtype(x_slab.dtype).itemsize
    sub_align = max(8, 32 // itemsize)

    # Whole slab width per block: lane-dense (multiple of 128) on the slab
    # path, and "full array dim" (always a legal block) on the ragged fallback.
    tile_cols = cols

    # Row tile: ~4 MiB per block => <= ~16 MiB pipeline with in/out double
    # buffering; sublane aligned, falling back to the full dim if needed.
    bytes_cap = 4 << 20
    row_cap = max(sub_align, bytes_cap // max(1, tile_cols * itemsize))
    tile_rows = _largest_aligned_divisor(rows, sub_align, row_cap) or rows

    grid = (rows // tile_rows,)
    extra = {"input_output_aliases": {0: 0}} if alias_input else {}

    return pl.pallas_call(
        _tiled_copy_kernel,
        out_shape=jax.ShapeDtypeStruct((rows, cols), x_slab.dtype),
        grid_spec=pltpu.PrefetchScalarGridSpec(
            num_scalar_prefetch=0,
            grid=grid,
            in_specs=[pl.BlockSpec((tile_rows, tile_cols), lambda i: (i, 0))],
            out_specs=pl.BlockSpec((tile_rows, tile_cols), lambda i: (i, 0)),
        ),
        compiler_params=pltpu.CompilerParams(
            # Plain "parallel": CORE_PARALLEL on v7x is only a modest,
            # bandwidth-shared win and would need profile validation.
            dimension_semantics=("parallel",),
            vmem_limit_bytes=48 << 20,
        ),
        cost_estimate=pl.CostEstimate(
            flops=0,
            transcendentals=0,
            bytes_accessed=2 * rows * cols * itemsize,
        ),
        **extra,
    )(x_slab)


# ---------------------------------------------------------------------------
# mode="dma": direct HBM->HBM DMA copy (no VMEM roundtrip)
# ---------------------------------------------------------------------------

def _dma_copy(x_slab):
    rows, cols = x_slab.shape
    itemsize = jnp.dtype(x_slab.dtype).itemsize
    total_bytes = rows * cols * itemsize

    # A few large descriptors let DMA queues overlap; tiny arrays get one.
    n_chunks = 1 if (total_bytes < (1 << 20) or rows < 4) else min(4, rows)
    base, rem = divmod(rows, n_chunks)
    chunks, start = [], 0
    for c in range(n_chunks):
        size = base + (1 if c < rem else 0)
        chunks.append((start, size))
        start += size

    def kernel(x_hbm, o_hbm, sem):
        copies = [
            pltpu.make_async_copy(
                x_hbm.at[pl.ds(r0, rc), :],
                o_hbm.at[pl.ds(r0, rc), :],
                sem.at[c],
            )
            for c, (r0, rc) in enumerate(chunks)
        ]
        for cp in copies:   # issue all HBM->HBM DMAs up front ...
            cp.start()
        for cp in copies:   # ... then drain them.
            cp.wait()

    return pl.pallas_call(
        kernel,
        out_shape=jax.ShapeDtypeStruct((rows, cols), x_slab.dtype),
        in_specs=[pl.BlockSpec(memory_space=pl.ANY)],
        out_specs=pl.BlockSpec(memory_space=pl.ANY),
        scratch_shapes=[pltpu.SemaphoreType.DMA((n_chunks,))],
        cost_estimate=pl.CostEstimate(
            flops=0,
            transcendentals=0,
            bytes_accessed=2 * total_bytes,
        ),
    )(x_slab)


# ---------------------------------------------------------------------------
# public wrapper
# ---------------------------------------------------------------------------

def flatten_layer(x, *, mode="dma", alias_input=False):
    """Equivalent of PyTorch FlattenLayer.forward: x.view(x.shape[0], -1).

    mode:
      "view"  -- metadata-only jnp.reshape (preferred in production: free).
      "dma"   -- standalone kernel, direct HBM->HBM DMA copy (default).
      "tiled" -- standalone kernel, BlockSpec-pipelined VMEM copy.
    """
    b = x.shape[0]
    f = math.prod(x.shape[1:])

    if mode == "view":
        return jnp.reshape(x, (b, f))

    itemsize = jnp.dtype(x.dtype).itemsize
    slab = _slab_shape(b, f, itemsize)
    x_slab = jnp.reshape(x, slab)          # free, wrapper-side relayout

    if mode == "dma":
        y_slab = _dma_copy(x_slab)
    elif mode == "tiled":
        y_slab = _tiled_copy(x_slab, alias_input=alias_input)
    else:
        raise ValueError(f"unknown mode: {mode!r}")

    return jnp.reshape(y_slab, (b, f))


if __name__ == "__main__":
    key = jax.random.PRNGKey(0)
    # Small NCHW input consistent with an image-model flatten layer.
    x = jax.random.normal(key, (2, 4, 16, 16), dtype=jnp.float32)
    y_ref = jnp.reshape(x, (x.shape[0], -1))

    y_dma = flatten_layer(x, mode="dma")       # HBM->HBM DMA kernel
    y_tiled = flatten_layer(x, mode="tiled")   # lane-dense VMEM-pipelined kernel
    y_view = flatten_layer(x, mode="view")     # free metadata-only path
    jax.block_until_ready((y_dma, y_tiled, y_view))

    for y in (y_dma, y_tiled, y_view):
        assert y.shape == (2, 4 * 16 * 16), y.shape
        assert y.dtype == x.dtype
        assert bool(jnp.array_equal(y, y_ref))

    print("KERNEL_OK")
</pallas_src>

<mosaic_0001>
module attributes {stable_mosaic.version = 11 : i64} {
  func.func @kernel(%arg0: memref<8x256xf32, #tpu.memory_space<any>>, %arg1: memref<8x256xf32, #tpu.memory_space<any>>, %arg2: memref<1x!tpu.dma_semaphore, #tpu.memory_space<semaphore_mem>>) attributes {dimension_semantics = [], scalar_prefetch = 0 : i64, scratch_operands = 1 : i64, tpu.core_type = #tpu.core_type<tc>} {
    %c0_i32 = arith.constant 0 : i32
    %c0_i32_0 = arith.constant 0 : i32
    %c0_i32_1 = arith.constant 0 : i32
    %0 = tpu.memref_slice %arg0[%c0_i32_0, %c0_i32_1] : memref<8x256xf32, #tpu.memory_space<any>> -> memref<8x256xf32, #tpu.memory_space<any>>
    %c0_i32_2 = arith.constant 0 : i32
    %c0_i32_3 = arith.constant 0 : i32
    %1 = tpu.memref_slice %arg1[%c0_i32_2, %c0_i32_3] : memref<8x256xf32, #tpu.memory_space<any>> -> memref<8x256xf32, #tpu.memory_space<any>>
    %2 = tpu.memref_slice %arg2[%c0_i32] : memref<1x!tpu.dma_semaphore, #tpu.memory_space<semaphore_mem>> -> memref<1x!tpu.dma_semaphore, #tpu.memory_space<semaphore_mem>>
    %3 = tpu.memref_squeeze %2 : memref<1x!tpu.dma_semaphore, #tpu.memory_space<semaphore_mem>> -> memref<!tpu.dma_semaphore, #tpu.memory_space<semaphore_mem>>
    tpu.enqueue_dma source(%0 : memref<8x256xf32, #tpu.memory_space<any>>) target(%1 : memref<8x256xf32, #tpu.memory_space<any>>) target_semaphore(%3 : memref<!tpu.dma_semaphore, #tpu.memory_space<semaphore_mem>>)
    %c0_i32_4 = arith.constant 0 : i32
    %c0_i32_5 = arith.constant 0 : i32
    %c0_i32_6 = arith.constant 0 : i32
    %4 = tpu.memref_slice %arg0[%c0_i32_5, %c0_i32_6] : memref<8x256xf32, #tpu.memory_space<any>> -> memref<8x256xf32, #tpu.memory_space<any>>
    %c0_i32_7 = arith.constant 0 : i32
    %c0_i32_8 = arith.constant 0 : i32
    %5 = tpu.memref_slice %arg1[%c0_i32_7, %c0_i32_8] : memref<8x256xf32, #tpu.memory_space<any>> -> memref<8x256xf32, #tpu.memory_space<any>>
    %6 = tpu.memref_slice %arg2[%c0_i32_4] : memref<1x!tpu.dma_semaphore, #tpu.memory_space<semaphore_mem>> -> memref<1x!tpu.dma_semaphore, #tpu.memory_space<semaphore_mem>>
    %7 = tpu.memref_squeeze %6 : memref<1x!tpu.dma_semaphore, #tpu.memory_space<semaphore_mem>> -> memref<!tpu.dma_semaphore, #tpu.memory_space<semaphore_mem>>
    tpu.wait_dma2 semaphore(%7 : memref<!tpu.dma_semaphore, #tpu.memory_space<semaphore_mem>>) src(%4 : memref<8x256xf32, #tpu.memory_space<any>>) dst(%5 : memref<8x256xf32, #tpu.memory_space<any>>)
    return
  }
}

</mosaic_0001>

<bundles_post_ra>
// kernel: tpu_custom_call.1
= control target key start
LH: loop header
LB: loop body
LE: loop exit
PB: predicated region body
PF: predicated region fallthrough
CT: control target
= control target key end

     0   :  { %s33_s12 = smov [#allocation2]   ;;  %s34_s13 = smov [#allocation3]   ;;  %s52_s0 = inlined_call_operand.hbm [shape: f32[8,256], index: 0, kind: input, shape index: {}]   ;;  %s53_s1 = inlined_call_operand.hbm [shape: f32[8,256], index: 1, kind: output, shape index: {}]  }
   0x1   :  { %s10_s8 = sshll.u32 %s52_s0, 4  ;;  %s12_s11 = sshll.u32 %s53_s1, 4  ;;  %s11_s8 = int_to_ptr.hbm [resolvable:$true] %s10_s8  ;;  %s13_s11 = int_to_ptr.hbm [resolvable:$true] %s12_s11 }
   0x2   :  { %s35_s14 = smov 0  }
   0x3   :  { %16 = dma.general %s11_s8, 256, %s13_s11, %s33_s12, %s34_s13, [#allocation4], %s35_s14, 0  }
   0x4   :  { %31 = dma.done.wait [#allocation2], 256 }
   0x5   :  { %32 = vsyncadd [#allocation2], 4294967040 }
   0x6   :  { %21 = vsyncmov [#allocation2] }
   0x9   :  { %s22_s15 = vpop.sfrf %21 }
   0xa   :  { %p27_p0 = scmp.ne.s32.totalorder %s22_s15, 0 }
   0xc   :  { %26 = shalt.err (%p27_p0)  }

</bundles_post_ra>
